<compile_context>
chip_gen: v7x
topology: tpu7x:2x2x1
jax: 0.10.0
libtpu: 0.0.40
codegen_flags: <defaults>
</compile_context>

<pallas_src>
import functools

import jax
import jax.numpy as jnp
from jax.experimental import pallas as pl
from jax.experimental.pallas import tpu as pltpu


def _round_up(x, m):
    return (x + m - 1) // m * m


def _cdiv(a, b):
    return (a + b - 1) // b


def _vmem_limit_bytes(streamed_bytes, resident_bytes, scratch_bytes):
    # Streamed tiles are double-buffered by the pipeline; resident tiles
    # (constant block index) and scratch are single copies.
    est = 2 * streamed_bytes + resident_bytes + scratch_bytes
    est = int(est * 1.25) + (2 << 20)            # compiler-internal headroom
    try:
        cap = int(0.75 * pltpu.get_tpu_info().vmem_capacity_bytes)
    except Exception:
        cap = 48 << 20                           # safe on v7x (64 MiB physical)
    return max(16 << 20, min(est, cap))


def _fused_kernel(x1_ref, x2_ref, w1_ref, b1_ref, w2_ref, b2_ref,
                  wc_ref, bc_ref, o_ref, h_scr):
    # grid = (M tiles, N tiles); N is the trailing ("arbitrary") axis so the
    # h scratch computed at ni == 0 persists for every N tile of this M tile.
    @pl.when(pl.program_id(1) == 0)
    def _():
        h1 = jnp.dot(x1_ref[...], w1_ref[...],
                     preferred_element_type=jnp.float32) + b1_ref[...]
        h2 = jnp.dot(x2_ref[...], w2_ref[...],
                     preferred_element_type=jnp.float32) + b2_ref[...]
        h_scr[...] = h1 * h2                      # keep h in f32 (accuracy)

    y = jnp.dot(h_scr[...].astype(wc_ref.dtype), wc_ref[...],
                preferred_element_type=jnp.float32) + bc_ref[...]
    o_ref[...] = jnp.maximum(y, 0.0).astype(o_ref.dtype)


@functools.partial(jax.jit, static_argnames=("compute_dtype", "out_dtype"))
def concat_linear_generator(xs, w1, b1, w2, b2, wc, bc, *,
                            compute_dtype=jnp.bfloat16, out_dtype=None):
    """xs: (2*M, F). w1,w2: (F,F) torch-style (out,in). wc: (N,F). b1,b2:(F,), bc:(N,)."""
    two_m, F = xs.shape
    assert two_m % 2 == 0
    M = two_m // 2
    N = wc.shape[0]
    out_dtype = xs.dtype if out_dtype is None else out_dtype

    x1 = xs[:M]
    x2 = xs[M:]

    # ---- tile sizes -------------------------------------------------------
    # bf16 packs 16 rows per vreg: keep M tiles 16-aligned; cap at 256 rows.
    tm = min(_round_up(M, 16), 256)
    M_pad = _round_up(M, tm)
    # v7x has 2 TensorCores: keep >= 2 steps on the "parallel" M axis when the
    # problem is big enough to split without extra masked-store padding.
    if M_pad // tm < 2 and M_pad >= 32:
        tm = _round_up(_cdiv(M_pad, 2), 16)
        M_pad = _round_up(M, tm)

    N_pad = _round_up(N, 128)
    if N_pad <= 512:
        tn = N_pad                                # single lane-dense N tile
    else:
        tn = next(c for c in (512, 256, 128) if N_pad % c == 0)

    # ---- operand prep (fused/hoisted by jit; torch Linear W is (out, in)) --
    bpe = jnp.dtype(compute_dtype).itemsize
    out_bpe = jnp.dtype(out_dtype).itemsize
    x1p = jnp.pad(x1, ((0, M_pad - M), (0, 0))).astype(compute_dtype)
    x2p = jnp.pad(x2, ((0, M_pad - M), (0, 0))).astype(compute_dtype)
    w1_t = w1.T.astype(compute_dtype)                                     # (F, F)
    w2_t = w2.T.astype(compute_dtype)                                     # (F, F)
    wc_t = jnp.pad(wc, ((0, N_pad - N), (0, 0))).T.astype(compute_dtype)  # (F, N_pad)
    b1_r = b1.reshape(1, F).astype(jnp.float32)
    b2_r = b2.reshape(1, F).astype(jnp.float32)
    bc_r = jnp.pad(bc, (0, N_pad - N)).reshape(1, N_pad).astype(jnp.float32)

    # TODO(synk): add a K (in_features) reduction grid axis (last, "arbitrary",
    # f32 accumulator + pl.when init/finalize) when 2*F*F bf16 weights no
    # longer fit the per-generation VMEM budget (F beyond ~2048 on v7x).

    # ---- VMEM budget ------------------------------------------------------
    streamed = (
        tm * F * bpe +        # x1 tile (streams over M)
        tm * F * bpe +        # x2 tile
        F * tn * bpe +        # Wc^T tile (streams over N)
        tn * 4 +              # bc tile
        tm * tn * out_bpe)    # output tile
    resident = (
        2 * F * F * bpe +     # W1^T, W2^T (constant block index)
        2 * F * 4)            # b1, b2
    scratch = tm * F * 4      # h (f32)
    vmem = _vmem_limit_bytes(streamed, resident, scratch)

    # ---- fused kernel ------------------------------------------------------
    y = pl.pallas_call(
        _fused_kernel,
        out_shape=jax.ShapeDtypeStruct((M_pad, N_pad), out_dtype),
        grid_spec=pltpu.PrefetchScalarGridSpec(
            num_scalar_prefetch=0,
            grid=(M_pad // tm, N_pad // tn),
            in_specs=[
                pl.BlockSpec((tm, F), lambda mi, ni: (mi, 0)),    # x1 tile
                pl.BlockSpec((tm, F), lambda mi, ni: (mi, 0)),    # x2 tile
                pl.BlockSpec((F, F), lambda mi, ni: (0, 0)),      # W1^T (resident)
                pl.BlockSpec((1, F), lambda mi, ni: (0, 0)),      # b1
                pl.BlockSpec((F, F), lambda mi, ni: (0, 0)),      # W2^T (resident)
                pl.BlockSpec((1, F), lambda mi, ni: (0, 0)),      # b2
                pl.BlockSpec((F, tn), lambda mi, ni: (0, ni)),    # Wc^T tile
                pl.BlockSpec((1, tn), lambda mi, ni: (0, ni)),    # bc tile
            ],
            out_specs=pl.BlockSpec((tm, tn), lambda mi, ni: (mi, ni)),
            scratch_shapes=[pltpu.VMEM((tm, F), jnp.float32)],    # h (f32)
        ),
        compiler_params=pltpu.CompilerParams(
            dimension_semantics=("parallel", "arbitrary"),
            vmem_limit_bytes=vmem,
        ),
    )(x1p, x2p, w1_t, b1_r, w2_t, b2_r, wc_t, bc_r)

    return y[:M, :N]


if __name__ == "__main__":
    # Small shapes consistent with the module (in_features -> F, out_features -> N)
    F_IN = 128
    N_OUT = 256
    M = 8                      # rows per chunk; xs has 2*M rows total

    key = jax.random.PRNGKey(0)
    k_xs, k_w1, k_b1, k_w2, k_b2, k_wc, k_bc = jax.random.split(key, 7)

    xs = jax.random.normal(k_xs, (2 * M, F_IN), dtype=jnp.float32)

    # torch Linear-style parameters: (out, in) weights + (out,) biases
    scale = 1.0 / jnp.sqrt(F_IN)
    w1 = jax.random.uniform(k_w1, (F_IN, F_IN), jnp.float32, -scale, scale)
    b1 = jax.random.uniform(k_b1, (F_IN,), jnp.float32, -scale, scale)
    w2 = jax.random.uniform(k_w2, (F_IN, F_IN), jnp.float32, -scale, scale)
    b2 = jax.random.uniform(k_b2, (F_IN,), jnp.float32, -scale, scale)
    wc = jax.random.uniform(k_wc, (N_OUT, F_IN), jnp.float32, -scale, scale)
    bc = jax.random.uniform(k_bc, (N_OUT,), jnp.float32, -scale, scale)

    out = concat_linear_generator(xs, w1, b1, w2, b2, wc, bc)
    out = jax.block_until_ready(out)

    # Pure-JAX f32 reference (kernel uses bf16 MXU inputs -> looser tolerance)
    x1, x2 = xs[:M], xs[M:]
    h_ref = (x1 @ w1.T + b1) * (x2 @ w2.T + b2)
    ref = jnp.maximum(h_ref @ wc.T + bc, 0.0)
    assert out.shape == (M, N_OUT)
    assert jnp.allclose(out, ref, atol=5e-2, rtol=5e-2), (
        "max abs diff = %f" % float(jnp.max(jnp.abs(out - ref))))

    print("KERNEL_OK")
</pallas_src>

<mosaic_0001>
module attributes {stable_mosaic.version = 11 : i64} {
  func.func @_fused_kernel(%arg0: i32, %arg1: i32, %arg2: memref<16x128xbf16, #tpu.memory_space<vmem>>, %arg3: memref<16x128xbf16, #tpu.memory_space<vmem>>, %arg4: memref<128x128xbf16, #tpu.memory_space<vmem>>, %arg5: memref<1x128xf32, #tpu.memory_space<vmem>>, %arg6: memref<128x128xbf16, #tpu.memory_space<vmem>>, %arg7: memref<1x128xf32, #tpu.memory_space<vmem>>, %arg8: memref<128x256xbf16, #tpu.memory_space<vmem>>, %arg9: memref<1x256xf32, #tpu.memory_space<vmem>>, %arg10: memref<16x256xf32, #tpu.memory_space<vmem>>, %arg11: memref<16x128xf32, #tpu.memory_space<vmem>>) attributes {dimension_semantics = [#tpu.dimension_semantics<parallel>, #tpu.dimension_semantics<arbitrary>], iteration_bounds = array<i64: 1, 1>, scalar_prefetch = 0 : i64, scratch_operands = 1 : i64, tpu.core_type = #tpu.core_type<tc>, window_params = [{transform_indices = @transform_0, window_bounds = array<i64: 16, 128>}, {transform_indices = @transform_1, window_bounds = array<i64: 16, 128>}, {pipeline_mode = #tpu.pipeline_mode<synchronous>, transform_indices = @transform_2, window_bounds = array<i64: 128, 128>}, {pipeline_mode = #tpu.pipeline_mode<synchronous>, transform_indices = @transform_3, window_bounds = array<i64: 1, 128>}, {pipeline_mode = #tpu.pipeline_mode<synchronous>, transform_indices = @transform_4, window_bounds = array<i64: 128, 128>}, {pipeline_mode = #tpu.pipeline_mode<synchronous>, transform_indices = @transform_5, window_bounds = array<i64: 1, 128>}, {transform_indices = @transform_6, window_bounds = array<i64: 128, 256>}, {transform_indices = @transform_7, window_bounds = array<i64: 1, 256>}, {transform_indices = @transform_8, window_bounds = array<i64: 16, 256>}]} {
    %c0_i32 = arith.constant 0 : i32
    %0 = arith.cmpi eq, %arg1, %c0_i32 : i32
    %1 = arith.extui %0 : i1 to i32
    %c0_i32_0 = arith.constant 0 : i32
    %2 = arith.cmpi ne, %1, %c0_i32_0 : i32
    scf.if %2 {
      %c0_9 = arith.constant 0 : index
      %c0_10 = arith.constant 0 : index
      %13 = vector.load %arg2[%c0_9, %c0_10] : memref<16x128xbf16, #tpu.memory_space<vmem>>, vector<16x128xbf16>
      %c0_11 = arith.constant 0 : index
      %c0_12 = arith.constant 0 : index
      %14 = vector.load %arg4[%c0_11, %c0_12] : memref<128x128xbf16, #tpu.memory_space<vmem>>, vector<128x128xbf16>
      %cst_13 = arith.constant dense<0.000000e+00> : vector<16x128xf32>
      %15 = tpu.matmul %13, %14, %cst_13 {dimension_numbers = #tpu.dot_dimension_numbers<[1], [0], [0], [1], [0, 0, 1, 1], [], []>} : vector<16x128xbf16>, vector<128x128xbf16>, vector<16x128xf32> -> vector<16x128xf32>
      %c0_14 = arith.constant 0 : index
      %c0_15 = arith.constant 0 : index
      %16 = vector.load %arg5[%c0_14, %c0_15] : memref<1x128xf32, #tpu.memory_space<vmem>>, vector<1x128xf32>
      %17 = vector.broadcast %16 : vector<1x128xf32> to vector<16x128xf32>
      %18 = arith.addf %15, %17 : vector<16x128xf32>
      %c0_16 = arith.constant 0 : index
      %c0_17 = arith.constant 0 : index
      %19 = vector.load %arg3[%c0_16, %c0_17] : memref<16x128xbf16, #tpu.memory_space<vmem>>, vector<16x128xbf16>
      %c0_18 = arith.constant 0 : index
      %c0_19 = arith.constant 0 : index
      %20 = vector.load %arg6[%c0_18, %c0_19] : memref<128x128xbf16, #tpu.memory_space<vmem>>, vector<128x128xbf16>
      %cst_20 = arith.constant dense<0.000000e+00> : vector<16x128xf32>
      %21 = tpu.matmul %19, %20, %cst_20 {dimension_numbers = #tpu.dot_dimension_numbers<[1], [0], [0], [1], [0, 0, 1, 1], [], []>} : vector<16x128xbf16>, vector<128x128xbf16>, vector<16x128xf32> -> vector<16x128xf32>
      %c0_21 = arith.constant 0 : index
      %c0_22 = arith.constant 0 : index
      %22 = vector.load %arg7[%c0_21, %c0_22] : memref<1x128xf32, #tpu.memory_space<vmem>>, vector<1x128xf32>
      %23 = vector.broadcast %22 : vector<1x128xf32> to vector<16x128xf32>
      %24 = arith.addf %21, %23 : vector<16x128xf32>
      %25 = arith.mulf %18, %24 : vector<16x128xf32>
      %c0_23 = arith.constant 0 : index
      %c0_24 = arith.constant 0 : index
      %26 = vector.load %arg11[%c0_23, %c0_24] : memref<16x128xf32, #tpu.memory_space<vmem>>, vector<16x128xf32>
      tpu.vector_store %arg11[%c0_23, %c0_24], %25 {strides = array<i32>} : memref<16x128xf32, #tpu.memory_space<vmem>>, vector<16x128xf32>,
    } else {
    }
    %c0 = arith.constant 0 : index
    %c0_1 = arith.constant 0 : index
    %3 = vector.load %arg11[%c0, %c0_1] : memref<16x128xf32, #tpu.memory_space<vmem>>, vector<16x128xf32>
    %4 = arith.truncf %3 : vector<16x128xf32> to vector<16x128xbf16>
    %c0_2 = arith.constant 0 : index
    %c0_3 = arith.constant 0 : index
    %5 = vector.load %arg8[%c0_2, %c0_3] : memref<128x256xbf16, #tpu.memory_space<vmem>>, vector<128x256xbf16>
    %cst = arith.constant dense<0.000000e+00> : vector<16x256xf32>
    %6 = tpu.matmul %4, %5, %cst {dimension_numbers = #tpu.dot_dimension_numbers<[1], [0], [0], [1], [0, 0, 1, 1], [], []>} : vector<16x128xbf16>, vector<128x256xbf16>, vector<16x256xf32> -> vector<16x256xf32>
    %c0_4 = arith.constant 0 : index
    %c0_5 = arith.constant 0 : index
    %7 = vector.load %arg9[%c0_4, %c0_5] : memref<1x256xf32, #tpu.memory_space<vmem>>, vector<1x256xf32>
    %8 = vector.broadcast %7 : vector<1x256xf32> to vector<16x256xf32>
    %9 = arith.addf %6, %8 : vector<16x256xf32>
    %cst_6 = arith.constant 0.000000e+00 : f32
    %10 = vector.broadcast %cst_6 : f32 to vector<16x256xf32>
    %11 = arith.maximumf %9, %10 : vector<16x256xf32>
    %c0_7 = arith.constant 0 : index
    %c0_8 = arith.constant 0 : index
    %12 = vector.load %arg10[%c0_7, %c0_8] : memref<16x256xf32, #tpu.memory_space<vmem>>, vector<16x256xf32>
    tpu.vector_store %arg10[%c0_7, %c0_8], %11 {strides = array<i32>} : memref<16x256xf32, #tpu.memory_space<vmem>>, vector<16x256xf32>,
    return
  }
  func.func @transform_0(%arg0: i32, %arg1: i32) -> (i32, i32) {
    %c0_i32 = arith.constant 0 : i32
    %c0_i32_0 = arith.constant 0 : i32
    return %arg0, %c0_i32 : i32, i32
  }
  func.func @transform_1(%arg0: i32, %arg1: i32) -> (i32, i32) {
    %c0_i32 = arith.constant 0 : i32
    %c0_i32_0 = arith.constant 0 : i32
    return %arg0, %c0_i32 : i32, i32
  }
  func.func @transform_2(%arg0: i32, %arg1: i32) -> (i32, i32) {
    %c0_i32 = arith.constant 0 : i32
    %c0_i32_0 = arith.constant 0 : i32
    %c0_i32_1 = arith.constant 0 : i32
    return %c0_i32, %c0_i32_0 : i32, i32
  }
  func.func @transform_3(%arg0: i32, %arg1: i32) -> (i32, i32) {
    %c0_i32 = arith.constant 0 : i32
    %c0_i32_0 = arith.constant 0 : i32
    %c0_i32_1 = arith.constant 0 : i32
    return %c0_i32, %c0_i32_0 : i32, i32
  }
  func.func @transform_4(%arg0: i32, %arg1: i32) -> (i32, i32) {
    %c0_i32 = arith.constant 0 : i32
    %c0_i32_0 = arith.constant 0 : i32
    %c0_i32_1 = arith.constant 0 : i32
    return %c0_i32, %c0_i32_0 : i32, i32
  }
  func.func @transform_5(%arg0: i32, %arg1: i32) -> (i32, i32) {
    %c0_i32 = arith.constant 0 : i32
    %c0_i32_0 = arith.constant 0 : i32
    %c0_i32_1 = arith.constant 0 : i32
    return %c0_i32, %c0_i32_0 : i32, i32
  }
  func.func @transform_6(%arg0: i32, %arg1: i32) -> (i32, i32) {
    %c0_i32 = arith.constant 0 : i32
    %c0_i32_0 = arith.constant 0 : i32
    return %c0_i32, %arg1 : i32, i32
  }
  func.func @transform_7(%arg0: i32, %arg1: i32) -> (i32, i32) {
    %c0_i32 = arith.constant 0 : i32
    %c0_i32_0 = arith.constant 0 : i32
    return %c0_i32, %arg1 : i32, i32
  }
  func.func @transform_8(%arg0: i32, %arg1: i32) -> (i32, i32) {
    %c0_i32 = arith.constant 0 : i32
    return %arg0, %arg1 : i32, i32
  }
}

</mosaic_0001>

<bundles_post_ra>
// kernel: concat_linear_generator.1
= control target key start
LH: loop header
LB: loop body
LE: loop exit
PB: predicated region body
PF: predicated region fallthrough
CT: control target
= control target key end

     0   :  { %v583_v0 = vmov 0.0   ;;  %vm584_vm0 = vmmov 0   ;;  %v585_v35 = vmov 0   ;;  %v299_v53 = vlaneseq  ;;  %s754_s2 = inlined_call_operand.vmem [shape: bf16[128,128], index: 2, kind: input, shape index: {}]   ;;  %s755_s4 = inlined_call_operand.vmem [shape: bf16[128,128], index: 4, kind: input, shape index: {}]   ;;  %s756_s0 = inlined_call_operand.vmem [shape: bf16[16,128], index: 0, kind: input, shape index: {}]   ;;  %s757_s1 = inlined_call_operand.vmem [shape: bf16[16,128], index: 1, kind: input, shape index: {}]   ;;  %s758_s6 = inlined_call_operand.vmem [shape: bf16[128,256], index: 6, kind: input, shape index: {}]   ;;  %s759_s3 = inlined_call_operand.vmem [shape: f32[1,128], index: 3, kind: input, shape index: {}]   ;;  %s760_s5 = inlined_call_operand.vmem [shape: f32[1,128], index: 5, kind: input, shape index: {}]   ;;  %s761_s7 = inlined_call_operand.vmem [shape: f32[1,256], index: 7, kind: input, shape index: {}]   ;;  %s762_s8 = inlined_call_operand.vmem [shape: f32[16,256], index: 8, kind: output, shape index: {}]  }
   0x1   :  { %498 = vmatprep.subr.bf16.mxu0 %v583_v0  ;;  %518 = vmatprep.subr.bf16.mxu1 %v583_v0  ;;  %v541_v1 = vld [vmem:[%s754_s2] sm:$0xff]   ;;  %v543_v3 = vld [vmem:[%s754_s2 + $0x8] sm:$0xff]   ;;  %v545_v5 = vld [vmem:[%s754_s2 + $0x10] sm:$0xff]  }
   0x2   :  { %v542_v2 = vld [vmem:[%s755_s4] sm:$0xff]   ;;  %514 = vmatprep.mubr.msk.bf16.mxu0 %vm584_vm0, %v583_v0  ;;  %534 = vmatprep.mubr.msk.bf16.mxu1 %vm584_vm0, %v583_v0  ;;  %v544_v4 = vld [vmem:[%s755_s4 + $0x8] sm:$0xff]   ;;  %v546_v6 = vld [vmem:[%s755_s4 + $0x10] sm:$0xff]   ;;  %v300_v54 = vshrl.u32 %v299_v53, 7 }
   0x3   :  { %499 = vmatpush3.bf16.msra.mxu0 %v541_v1  ;;  %519 = vmatpush3.bf16.msra.mxu1 %v542_v2  ;;  %v547_v7 = vld [vmem:[%s754_s2 + $0x18] sm:$0xff]   ;;  %v549_v9 = vld [vmem:[%s754_s2 + $0x20] sm:$0xff]   ;;  %v551_v11 = vld [vmem:[%s754_s2 + $0x28] sm:$0xff]  }
   0x4   :  { %500 = vmatprep.subr.bf16.mxu0 %v583_v0  ;;  %520 = vmatprep.subr.bf16.mxu1 %v583_v0  ;;  %v548_v8 = vld [vmem:[%s755_s4 + $0x18] sm:$0xff]   ;;  %v550_v10 = vld [vmem:[%s755_s4 + $0x20] sm:$0xff]   ;;  %v552_v12 = vld [vmem:[%s755_s4 + $0x28] sm:$0xff]   ;;  %v301_v55 = vsub.s32 0, %v300_v54  ;;  %v305_v57 = vsub.s32 1, %v300_v54 }
   0x5   :  { %v553_v13 = vld [vmem:[%s754_s2 + $0x30] sm:$0xff]   ;;  %v555_v15 = vld [vmem:[%s754_s2 + $0x38] sm:$0xff]   ;;  %v561_v17 = vld [vmem:[%s758_s6 + $0x4] ss:$8 sps:$4 sm:$0xff]  }
   0x6   :  { %v554_v14 = vld [vmem:[%s755_s4 + $0x30] sm:$0xff]   ;;  %v556_v16 = vld [vmem:[%s755_s4 + $0x38] sm:$0xff]   ;;  %v557_v18 = vld [vmem:[%s756_s0] sm:$0xff]  }
   0x7   :  { %501 = vmatpush3.bf16.msra.mxu0 %v543_v3  ;;  %521 = vmatpush3.bf16.msra.mxu1 %v544_v4  ;;  %v558_v19 = vld [vmem:[%s757_s1] sm:$0xff]   ;;  %v564_v21 = vld [vmem:[%s758_s6 + $0x14] ss:$8 sps:$4 sm:$0xff]   ;;  %v562_v22 = vld [vmem:[%s758_s6 + $0x10] ss:$8 sps:$4 sm:$0xff]  }
   0x8   :  { %502 = vmatprep.subr.bf16.mxu0 %v583_v0  ;;  %522 = vmatprep.subr.bf16.mxu1 %v583_v0  ;;  %v559_v20 = vld [vmem:[%s758_s6] ss:$8 sps:$4 sm:$0xff]   ;;  %v567_v23 = vld [vmem:[%s758_s6 + $0x24] ss:$8 sps:$4 sm:$0xff]   ;;  %v570_v25 = vld [vmem:[%s758_s6 + $0x34] ss:$8 sps:$4 sm:$0xff]  }
   0x9   :  { %v565_v24 = vld [vmem:[%s758_s6 + $0x20] ss:$8 sps:$4 sm:$0xff]   ;;  %v568_v26 = vld [vmem:[%s758_s6 + $0x30] ss:$8 sps:$4 sm:$0xff]   ;;  %v573_v27 = vld [vmem:[%s758_s6 + $0x44] ss:$8 sps:$4 sm:$0xff]  }
   0xa   :  { %v571_v28 = vld [vmem:[%s758_s6 + $0x40] ss:$8 sps:$4 sm:$0xff]   ;;  %v576_v29 = vld [vmem:[%s758_s6 + $0x54] ss:$8 sps:$4 sm:$0xff]   ;;  %v574_v30 = vld [vmem:[%s758_s6 + $0x50] ss:$8 sps:$4 sm:$0xff]  }
   0xb   :  { %503 = vmatpush3.bf16.msra.mxu0 %v545_v5  ;;  %523 = vmatpush3.bf16.msra.mxu1 %v546_v6  ;;  %v579_v31 = vld [vmem:[%s758_s6 + $0x64] ss:$8 sps:$4 sm:$0xff]   ;;  %v577_v32 = vld [vmem:[%s758_s6 + $0x60] ss:$8 sps:$4 sm:$0xff]   ;;  %v582_v33 = vld [vmem:[%s758_s6 + $0x74] ss:$8 sps:$4 sm:$0xff]  }
   0xc   :  { %504 = vmatprep.subr.bf16.mxu0 %v583_v0  ;;  %524 = vmatprep.subr.bf16.mxu1 %v583_v0  ;;  %v580_v34 = vld [vmem:[%s758_s6 + $0x70] ss:$8 sps:$4 sm:$0xff]   ;;  %v444_v36 = vld [vmem:[%s759_s3] ss:$0 sm:$0xff] }
   0xd   :  { %v454_v37 = vld [vmem:[%s760_s5] ss:$0 sm:$0xff] }
   0xe   :  { %v297_v56 = vld [vmem:[%s761_s7] sm:$0x3] }
   0xf   :  { %505 = vmatpush3.bf16.msra.mxu0 %v547_v7  ;;  %525 = vmatpush3.bf16.msra.mxu1 %v548_v8  ;;  %v302_v58 = vrot.slane %v297_v56, %v301_v55  ;;  %v306_v59 = vrot.slane %v297_v56, %v305_v57 }
  0x10   :  { %506 = vmatprep.subr.bf16.mxu0 %v583_v0  ;;  %526 = vmatprep.subr.bf16.mxu1 %v583_v0 }
  0x13   :  { %507 = vmatpush3.bf16.msra.mxu0 %v549_v9  ;;  %527 = vmatpush3.bf16.msra.mxu1 %v550_v10 }
  0x14   :  { %508 = vmatprep.subr.bf16.mxu0 %v583_v0  ;;  %528 = vmatprep.subr.bf16.mxu1 %v583_v0 }
  0x17   :  { %509 = vmatpush3.bf16.msra.mxu0 %v551_v11  ;;  %529 = vmatpush3.bf16.msra.mxu1 %v552_v12 }
  0x18   :  { %510 = vmatprep.subr.bf16.mxu0 %v583_v0  ;;  %530 = vmatprep.subr.bf16.mxu1 %v583_v0 }
  0x1b   :  { %511 = vmatpush3.bf16.msra.mxu0 %v553_v13  ;;  %531 = vmatpush3.bf16.msra.mxu1 %v554_v14 }
  0x1c   :  { %512 = vmatprep.subr.bf16.mxu0 %v583_v0  ;;  %532 = vmatprep.subr.bf16.mxu1 %v583_v0 }
  0x1f   :  { %513 = vmatpush3.bf16.msra.mxu0 %v555_v15  ;;  %533 = vmatpush3.bf16.msra.mxu1 %v556_v16 }
  0x20   :  { %389 = vmatprep.subr.bf16.mxu0 %v561_v17 }
  0x22   :  { %515 = vmatmul.mubr.bf16.vlgmr.msra.gmra.mrb[0].mxu0 %v557_v18  ;;  %535 = vmatmul.mubr.bf16.vlgmr.msra.gmra.mrb[0].mxu1 %v558_v19 }
  0x23   :  { %390 = vmatpush1.bf16.msra.mxu0 %v559_v20  ;;  %421 = vmatprep.mubr.bf16.mxu0 %v585_v35 }
  0x24   :  { %391 = vmatprep.subr.bf16.mxu0 %v564_v21 }
  0x27   :  { %392 = vmatpush1.bf16.msra.mxu0 %v562_v22 }
  0x28   :  { %393 = vmatprep.subr.bf16.mxu0 %v567_v23 }
  0x2b   :  { %394 = vmatpush1.bf16.msra.mxu0 %v565_v24 }
  0x2c   :  { %395 = vmatprep.subr.bf16.mxu0 %v570_v25 }
  0x2f   :  { %396 = vmatpush1.bf16.msra.mxu0 %v568_v26 }
  0x30   :  { %397 = vmatprep.subr.bf16.mxu0 %v573_v27 }
  0x33   :  { %398 = vmatpush1.bf16.msra.mxu0 %v571_v28 }
  0x34   :  { %399 = vmatprep.subr.bf16.mxu0 %v576_v29 }
  0x37   :  { %400 = vmatpush1.bf16.msra.mxu0 %v574_v30 }
  0x38   :  { %401 = vmatprep.subr.bf16.mxu0 %v579_v31 }
  0x3b   :  { %402 = vmatpush1.bf16.msra.mxu0 %v577_v32 }
  0x3c   :  { %403 = vmatprep.subr.bf16.mxu0 %v582_v33 }
  0x3f   :  { %404 = vmatpush1.bf16.msra.mxu0 %v580_v34 }
  0xf5   :  { %v147_v38 = vpop.f32.mrb[0].mxu0  ;;  %v267_v40 = vpop.f32.mrb[0].mxu1 }
  0xf6   :  { %v148_v39 = vadd.f32 %v444_v36, %v147_v38  ;;  %v516_v41 = vpop.f32.mrb[1].mxu0  ;;  %v268_v42 = vadd.f32 %v454_v37, %v267_v40  ;;  %v536_v43 = vpop.f32.mrb[1].mxu1 }
  0xf7   :  { %v150_v44 = vpop.f32.mrb[2].mxu0  ;;  %v270_v46 = vpop.f32.mrb[2].mxu1 }
  0xf8   :  { %v151_v45 = vadd.f32 %v444_v36, %v150_v44  ;;  %v517_v47 = vpop.f32.mrb[3].mxu0  ;;  %v274_v48 = vmul.f32 %v268_v42, %v148_v39  ;;  %v271_v49 = vadd.f32 %v454_v37, %v270_v46  ;;  %v537_v50 = vpop.f32.mrb[3].mxu1 }
  0xfa   :  { %v275_v51 = vmul.f32 %v271_v49, %v151_v45 }
  0xfc   :  { %v280_v52 = vpack.c.bf16 %v275_v51, %v274_v48 }
  0xfe   :  { %422 = vmatmul.mubr.bf16.vlgmr.msra.gmra.mrb[4].mxu0 %v280_v52 }
 0x1d1   :  { %v423_v60 = vpop.f32.mrb[4].mxu0 }
 0x1d2   :  { %v424_v61 = vadd.f32 %v423_v60, %v302_v58  ;;  %v425_v62 = vpop.f32.mrb[5].mxu0 }
 0x1d3   :  { %v426_v63 = vadd.f32 %v425_v62, %v306_v59  ;;  %v427_v0 = vpop.f32.mrb[6].mxu0 }
 0x1d4   :  { %v432_v1 = vmax.f32 %v424_v61, 0.0  ;;  %v428_v2 = vadd.f32 %v427_v0, %v302_v58  ;;  %v429_v3 = vpop.f32.mrb[7].mxu0 }
 0x1d5   :  { %v433_v4 = vmax.f32 %v426_v63, 0.0  ;;  %v430_v5 = vadd.f32 %v429_v3, %v306_v59 }
 0x1d6   :  { %436 = vst [vmem:[%s762_s8] sm:$0xff] %v432_v1  ;;  %v434_v6 = vmax.f32 %v428_v2, 0.0 }
 0x1d7   :  { %437 = vst [vmem:[%s762_s8 + $0x8] sm:$0xff] %v433_v4  ;;  %v435_v7 = vmax.f32 %v430_v5, 0.0 }
 0x1d8   :  { %438 = vst [vmem:[%s762_s8 + $0x10] sm:$0xff] %v434_v6 }
 0x1d9   :  { %439 = vst [vmem:[%s762_s8 + $0x18] sm:$0xff] %v435_v7 }

</bundles_post_ra>
